<compile_context>
chip_gen: v7x
topology: tpu7x:2x2x1
jax: 0.10.0
libtpu: 0.0.40
codegen_flags: <defaults>
</compile_context>

<pallas_src>
import functools

import jax
import jax.numpy as jnp
from jax.experimental import pallas as pl
from jax.experimental.pallas import tpu as pltpu


def _round_up(x, m):
    return (x + m - 1) // m * m


def _sigmoid_via_tanh(x):
    # sigmoid(x) == 0.5 * (1 + tanh(x / 2)); a single EUP transcendental.
    return 0.5 * (1.0 + jnp.tanh(0.5 * x))


def _lstm_decoder_kernel(x_ref, h0_ref, c0_ref,
                         w_ih_ref, w_hh_ref, b_ref, w_lin_ref, b_lin_ref,
                         out_ref, h_out_ref, c_out_ref,
                         h_scr, c_scr):
    """One LSTM cell step per grid iteration t, fused with the Linear head.

    Weights are VMEM-resident across the whole grid (their index_map is
    constant); the recurrent state lives in f32 VMEM scratch and is written
    back to HBM only on the last grid step.
    """
    t = pl.program_id(0)

    @pl.when(t == 0)
    def _():  # seed recurrent state from the encoder hidden state
        h_scr[...] = h0_ref[...].astype(jnp.float32)
        c_scr[...] = c0_ref[...].astype(jnp.float32)

    Hp = h_scr.shape[-1]                 # lane-padded hidden size (multiple of 128)
    mm_dtype = w_ih_ref.dtype            # bf16 (default) or f32 MXU operand dtype

    h_prev = h_scr[...]                  # (Bp, Hp)  f32
    c_prev = c_scr[...]                  # (Bp, Hp)  f32

    # Gate pre-activations: two MXU dots with f32 accumulation.  Each gate
    # occupies its own lane-aligned 128-multiple column block (i | f | g | o),
    # so the slices below are free view selections.
    gates = (jnp.dot(x_ref[...].astype(mm_dtype), w_ih_ref[...],
                     preferred_element_type=jnp.float32)
             + jnp.dot(h_prev.astype(mm_dtype), w_hh_ref[...],
                       preferred_element_type=jnp.float32)
             + b_ref[...])               # (Bp, 4*Hp) f32

    i_g = _sigmoid_via_tanh(gates[:, 0 * Hp:1 * Hp])
    f_g = _sigmoid_via_tanh(gates[:, 1 * Hp:2 * Hp])
    g_g = jnp.tanh(gates[:, 2 * Hp:3 * Hp])
    o_g = _sigmoid_via_tanh(gates[:, 3 * Hp:4 * Hp])

    c_new = f_g * c_prev + i_g * g_g     # all elementwise math in f32 (v5e-safe)
    h_new = o_g * jnp.tanh(c_new)

    h_scr[...] = h_new                   # carry state in VMEM, never via HBM
    c_scr[...] = c_new

    # Linear head; Op is a multiple of 128 -> lane-dense unmasked stores.
    out = (jnp.dot(h_new.astype(mm_dtype), w_lin_ref[...],
                   preferred_element_type=jnp.float32) + b_lin_ref[...])
    out_ref[...] = out.astype(out_ref.dtype)

    @pl.when(t == pl.num_programs(0) - 1)
    def _():  # single HBM writeback of the recurrent state
        h_out_ref[...] = h_new
        c_out_ref[...] = c_new


def prepare_params(params, weights_dtype=jnp.bfloat16):
    """One-time (hoisted) weight preparation. Call ONCE per model, not per step.

    params (PyTorch layout, gate order i, f, g, o):
      w_ih (4H, I), w_hh (4H, H), b_ih (4H,), b_hh (4H,), w_lin (O, H), b_lin (O,)

    Returns padded, transposed, gate-packed arrays laid out for the kernel:
      w_ih_t (Ip, 4*Hp), w_hh_t (Hp, 4*Hp)  -- each gate in its own 128-aligned
                                               lane block, zero-padded beyond H
      b      (1, 4*Hp) = b_ih + b_hh (f32)
      w_lin_t (Hp, Op), b_lin (1, Op)
    Hp/Op are rounded up to 128 (lane tile), Ip to 8 (sublane tile).
    Weights default to bf16 (halves HBM traffic; MXU-native with f32 accum);
    biases stay f32 because they are added post-accumulation.
    """
    H = params["w_hh"].shape[1]
    I = params["w_ih"].shape[1]
    O = params["w_lin"].shape[0]
    Hp = _round_up(H, 128)
    Op = _round_up(O, 128)
    Ip = _round_up(I, 8)

    def gate_pack(w, rows, rows_p):                       # w: (4H, rows)
        g = jnp.transpose(w.reshape(4, H, rows), (0, 2, 1))        # (4, rows, H)
        g = jnp.pad(g, ((0, 0), (0, rows_p - rows), (0, Hp - H)))  # (4, rows_p, Hp)
        return jnp.transpose(g, (1, 0, 2)).reshape(rows_p, 4 * Hp)

    w_ih_t = gate_pack(params["w_ih"], I, Ip).astype(weights_dtype)
    w_hh_t = gate_pack(params["w_hh"], H, Hp).astype(weights_dtype)
    b = jnp.pad((params["b_ih"] + params["b_hh"]).reshape(4, H),
                ((0, 0), (0, Hp - H))).reshape(1, 4 * Hp).astype(jnp.float32)
    w_lin_t = jnp.pad(params["w_lin"].T,
                      ((0, Hp - H), (0, Op - O))).astype(weights_dtype)
    b_lin = jnp.pad(params["b_lin"], (0, Op - O)).reshape(1, Op).astype(jnp.float32)
    return {"w_ih_t": w_ih_t, "w_hh_t": w_hh_t, "b": b,
            "w_lin_t": w_lin_t, "b_lin": b_lin}


def _decode_steps(x_seq, h0, c0, prep):
    """Run T fused LSTM+Linear steps in one pallas_call.

    x_seq: (T, B, I); h0, c0: (B, H).  Returns padded (out_seq, h_T, c_T).
    """
    T, B, I = x_seq.shape
    H = h0.shape[-1]
    Ip = prep["w_ih_t"].shape[0]
    Hp = prep["w_hh_t"].shape[0]
    Op = prep["w_lin_t"].shape[1]
    Bp = _round_up(max(B, 8), 8)         # at least one full sublane tile

    x_p = jnp.pad(x_seq, ((0, 0), (0, Bp - B), (0, Ip - I)))
    h0_p = jnp.pad(h0.astype(jnp.float32), ((0, Bp - B), (0, Hp - H)))
    c0_p = jnp.pad(c0.astype(jnp.float32), ((0, Bp - B), (0, Hp - H)))

    wbytes = jnp.dtype(prep["w_ih_t"].dtype).itemsize
    xbytes = jnp.dtype(x_seq.dtype).itemsize
    flops = T * (2 * Bp * (Ip + Hp) * 4 * Hp + 2 * Bp * Hp * Op)
    transcendentals = T * 5 * Bp * Hp    # 4 gates + tanh(c) per step
    bytes_accessed = (
        (Ip + Hp) * 4 * Hp * wbytes + Hp * Op * wbytes   # weights, fetched ONCE
        + (4 * Hp + Op) * 4                              # biases
        + T * Bp * (Ip * xbytes + Op * 4)                # x in / out back per step
        + 4 * Bp * Hp * 4)                               # h0, c0 in; h_T, c_T out

    full = lambda shape: pl.BlockSpec(shape, lambda t: (0,) * len(shape))

    out_seq, h_out, c_out = pl.pallas_call(
        _lstm_decoder_kernel,
        out_shape=(
            jax.ShapeDtypeStruct((T, Bp, Op), x_seq.dtype),
            jax.ShapeDtypeStruct((Bp, Hp), jnp.float32),
            jax.ShapeDtypeStruct((Bp, Hp), jnp.float32),
        ),
        grid_spec=pltpu.PrefetchScalarGridSpec(
            num_scalar_prefetch=0,
            grid=(T,),
            in_specs=[
                pl.BlockSpec((None, Bp, Ip), lambda t: (t, 0, 0)),  # x[t]
                full((Bp, Hp)),                                     # h0 (read at t==0)
                full((Bp, Hp)),                                     # c0 (read at t==0)
                full((Ip, 4 * Hp)),                                 # W_ih^T (VMEM-resident)
                full((Hp, 4 * Hp)),                                 # W_hh^T (VMEM-resident)
                full((1, 4 * Hp)),                                  # b_ih + b_hh
                full((Hp, Op)),                                     # W_lin^T (VMEM-resident)
                full((1, Op)),                                      # b_lin
            ],
            out_specs=(
                pl.BlockSpec((None, Bp, Op), lambda t: (t, 0, 0)),  # out[t]
                full((Bp, Hp)),                                     # h_T
                full((Bp, Hp)),                                     # c_T
            ),
            scratch_shapes=[pltpu.VMEM((Bp, Hp), jnp.float32),      # h carry
                            pltpu.VMEM((Bp, Hp), jnp.float32)],     # c carry
        ),
        # Recurrent state reuses its own HBM buffers: h0 -> h_T, c0 -> c_T.
        input_output_aliases={1: 1, 2: 2},
        # Demo weights are tiny so the default scoped VMEM limit is plenty.
        # For production sizes with VMEM-resident weights, add
        # vmem_limit_bytes=... here (v6e: raise above the 32 MiB scoped
        # default; v7x: stay under 64 MiB physical, or tile the 4*Hp / Op
        # weight axes via extra grid dims if the resident set will not fit).
        compiler_params=pltpu.CompilerParams(
            dimension_semantics=("arbitrary",)),
        cost_estimate=pl.CostEstimate(flops=flops,
                                      transcendentals=transcendentals,
                                      bytes_accessed=bytes_accessed),
    )(x_p, h0_p, c0_p,
      prep["w_ih_t"], prep["w_hh_t"], prep["b"],
      prep["w_lin_t"], prep["b_lin"])
    return out_seq, h_out, c_out


@functools.partial(jax.jit, static_argnames=("output_size",))
def lstm_decoder_forward(x, hidden, prep, *, output_size):
    """PyTorch-equivalent forward: x (B, I); hidden = (h0, c0), each (1, B, H).

    Returns (output (B, O), (h1, c1) each (1, B, H)).  Implemented as the
    T=1 case of the fused multi-step decode kernel.
    """
    h0, c0 = hidden
    if h0.shape[0] != 1:
        raise NotImplementedError("kernel supports num_layers == 1")
    B = x.shape[0]
    H = h0.shape[-1]
    out_seq, h_out, c_out = _decode_steps(x[None], h0[0], c0[0], prep)
    out = out_seq[0, :B, :output_size]
    return out, (h_out[:B, :H][None], c_out[:B, :H][None])


@functools.partial(jax.jit, static_argnames=("output_size",))
def lstm_decoder_rollout(x_seq, hidden, prep, *, output_size):
    """Applies the module forward T times (teacher-forced, x_seq: (T, B, I))
    inside ONE grid=(T,) pallas_call: weights stay VMEM-resident for all
    steps, h/c stay in VMEM scratch, and only out[t] leaves the chip per step.
    Returns (outputs (T, B, O), (h_T, c_T) each (1, B, H))."""
    h0, c0 = hidden
    if h0.shape[0] != 1:
        raise NotImplementedError("kernel supports num_layers == 1")
    B = x_seq.shape[1]
    H = h0.shape[-1]
    out_seq, h_out, c_out = _decode_steps(x_seq, h0[0], c0[0], prep)
    return (out_seq[:, :B, :output_size],
            (h_out[:B, :H][None], c_out[:B, :H][None]))


def reference_forward(x, h0, c0, params):
    """Plain-JAX reference of the PyTorch forward for validation."""
    H = params["w_hh"].shape[1]
    gates = (x @ params["w_ih"].T + params["b_ih"]
             + h0[0] @ params["w_hh"].T + params["b_hh"])
    i_g = jax.nn.sigmoid(gates[:, :H])
    f_g = jax.nn.sigmoid(gates[:, H:2 * H])
    g_g = jnp.tanh(gates[:, 2 * H:3 * H])
    o_g = jax.nn.sigmoid(gates[:, 3 * H:])
    c1 = f_g * c0[0] + i_g * g_g
    h1 = o_g * jnp.tanh(c1)
    out = h1 @ params["w_lin"].T + params["b_lin"]
    return out, (h1[None], c1[None])


def reference_rollout(x_seq, h0, c0, params):
    h, c = h0, c0
    outs = []
    for t in range(x_seq.shape[0]):
        o, (h, c) = reference_forward(x_seq[t], h, c, params)
        outs.append(o)
    return jnp.stack(outs), (h, c)


def init_params(key, input_size, output_size, hidden_size):
    """Deterministic init mirroring PyTorch parameter shapes (gate order i,f,g,o)."""
    ks = jax.random.split(key, 6)
    k = 1.0 / jnp.sqrt(hidden_size)
    u = lambda kk, shape: jax.random.uniform(kk, shape, jnp.float32, -k, k)
    return {
        "w_ih": u(ks[0], (4 * hidden_size, input_size)),
        "w_hh": u(ks[1], (4 * hidden_size, hidden_size)),
        "b_ih": u(ks[2], (4 * hidden_size,)),
        "b_hh": u(ks[3], (4 * hidden_size,)),
        "w_lin": u(ks[4], (output_size, hidden_size)),
        "b_lin": u(ks[5], (output_size,)),
    }


if __name__ == "__main__":
    batch, input_size, hidden_size, output_size = 4, 8, 32, 8
    T = 6

    key = jax.random.PRNGKey(0)
    kp, kx, kh, kc, ks = jax.random.split(key, 5)
    params = init_params(kp, input_size, output_size, hidden_size)

    x = jax.random.normal(kx, (batch, input_size), jnp.float32)
    h0 = jax.random.normal(kh, (1, batch, hidden_size), jnp.float32)
    c0 = jax.random.normal(kc, (1, batch, hidden_size), jnp.float32)
    x_seq = jax.random.normal(ks, (T, batch, input_size), jnp.float32)

    out_r, (h1_r, c1_r) = reference_forward(x, h0, c0, params)
    outs_r, (hT_r, cT_r) = reference_rollout(x_seq, h0, c0, params)

    # ---- exact-precision path (f32 weights): tight checks ------------------
    prep_f32 = prepare_params(params, weights_dtype=jnp.float32)
    out, (h1, c1) = lstm_decoder_forward(x, (h0, c0), prep_f32,
                                         output_size=output_size)
    outs, (hT, cT) = lstm_decoder_rollout(x_seq, (h0, c0), prep_f32,
                                          output_size=output_size)
    jax.block_until_ready((out, h1, c1, outs, hT, cT))
    assert jnp.allclose(out, out_r, atol=1e-5, rtol=1e-5)
    assert jnp.allclose(h1, h1_r, atol=1e-5, rtol=1e-5)
    assert jnp.allclose(c1, c1_r, atol=1e-5, rtol=1e-5)
    assert jnp.allclose(outs, outs_r, atol=1e-4, rtol=1e-4)
    assert jnp.allclose(hT, hT_r, atol=1e-4, rtol=1e-4)
    assert jnp.allclose(cT, cT_r, atol=1e-4, rtol=1e-4)

    # ---- production path (bf16 weights, f32 accum/elementwise): loose check -
    prep_bf16 = prepare_params(params)            # default: bfloat16 weights
    out_b, (h1_b, c1_b) = lstm_decoder_forward(x, (h0, c0), prep_bf16,
                                               output_size=output_size)
    outs_b, (hT_b, cT_b) = lstm_decoder_rollout(x_seq, (h0, c0), prep_bf16,
                                                output_size=output_size)
    jax.block_until_ready((out_b, outs_b, hT_b))
    assert jnp.allclose(out_b, out_r, atol=5e-2, rtol=5e-2)
    assert jnp.allclose(outs_b, outs_r, atol=1e-1, rtol=1e-1)
    assert jnp.allclose(hT_b, hT_r, atol=1e-1, rtol=1e-1)

    print("KERNEL_OK")
</pallas_src>

<mosaic_0001>
module attributes {stable_mosaic.version = 11 : i64} {
  func.func @_lstm_decoder_kernel(%arg0: i32, %arg1: memref<1x8x8xf32, #tpu.memory_space<vmem>>, %arg2: memref<8x128xf32, #tpu.memory_space<vmem>>, %arg3: memref<8x128xf32, #tpu.memory_space<vmem>>, %arg4: memref<8x512xf32, #tpu.memory_space<vmem>>, %arg5: memref<128x512xf32, #tpu.memory_space<vmem>>, %arg6: memref<1x512xf32, #tpu.memory_space<vmem>>, %arg7: memref<128x128xf32, #tpu.memory_space<vmem>>, %arg8: memref<1x128xf32, #tpu.memory_space<vmem>>, %arg9: memref<1x8x128xf32, #tpu.memory_space<vmem>>, %arg10: memref<8x128xf32, #tpu.memory_space<vmem>>, %arg11: memref<8x128xf32, #tpu.memory_space<vmem>>, %arg12: memref<8x128xf32, #tpu.memory_space<vmem>>, %arg13: memref<8x128xf32, #tpu.memory_space<vmem>>) attributes {dimension_semantics = [#tpu.dimension_semantics<arbitrary>], iteration_bounds = array<i64: 1>, scalar_prefetch = 0 : i64, scratch_operands = 2 : i64, tpu.core_type = #tpu.core_type<tc>, window_params = [{transform_indices = @transform_0, window_bounds = array<i64: 1, 8, 8>}, {pipeline_mode = #tpu.pipeline_mode<synchronous>, transform_indices = @transform_1, window_bounds = array<i64: 8, 128>}, {pipeline_mode = #tpu.pipeline_mode<synchronous>, transform_indices = @transform_2, window_bounds = array<i64: 8, 128>}, {pipeline_mode = #tpu.pipeline_mode<synchronous>, transform_indices = @transform_3, window_bounds = array<i64: 8, 512>}, {pipeline_mode = #tpu.pipeline_mode<synchronous>, transform_indices = @transform_4, window_bounds = array<i64: 128, 512>}, {pipeline_mode = #tpu.pipeline_mode<synchronous>, transform_indices = @transform_5, window_bounds = array<i64: 1, 512>}, {pipeline_mode = #tpu.pipeline_mode<synchronous>, transform_indices = @transform_6, window_bounds = array<i64: 128, 128>}, {pipeline_mode = #tpu.pipeline_mode<synchronous>, transform_indices = @transform_7, window_bounds = array<i64: 1, 128>}, {transform_indices = @transform_8, window_bounds = array<i64: 1, 8, 128>}, {pipeline_mode = #tpu.pipeline_mode<synchronous>, transform_indices = @transform_9, window_bounds = array<i64: 8, 128>}, {pipeline_mode = #tpu.pipeline_mode<synchronous>, transform_indices = @transform_10, window_bounds = array<i64: 8, 128>}]} {
    %c0_i32 = arith.constant 0 : i32
    %0 = arith.cmpi eq, %arg0, %c0_i32 : i32
    %1 = arith.extui %0 : i1 to i32
    %c0_i32_0 = arith.constant 0 : i32
    %2 = arith.cmpi ne, %1, %c0_i32_0 : i32
    scf.if %2 {
      %c0_37 = arith.constant 0 : index
      %c0_38 = arith.constant 0 : index
      %59 = vector.load %arg2[%c0_37, %c0_38] : memref<8x128xf32, #tpu.memory_space<vmem>>, vector<8x128xf32>
      %c0_39 = arith.constant 0 : index
      %c0_40 = arith.constant 0 : index
      %60 = vector.load %arg12[%c0_39, %c0_40] : memref<8x128xf32, #tpu.memory_space<vmem>>, vector<8x128xf32>
      tpu.vector_store %arg12[%c0_39, %c0_40], %59 {strides = array<i32>} : memref<8x128xf32, #tpu.memory_space<vmem>>, vector<8x128xf32>,
      %c0_41 = arith.constant 0 : index
      %c0_42 = arith.constant 0 : index
      %61 = vector.load %arg3[%c0_41, %c0_42] : memref<8x128xf32, #tpu.memory_space<vmem>>, vector<8x128xf32>
      %c0_43 = arith.constant 0 : index
      %c0_44 = arith.constant 0 : index
      %62 = vector.load %arg13[%c0_43, %c0_44] : memref<8x128xf32, #tpu.memory_space<vmem>>, vector<8x128xf32>
      tpu.vector_store %arg13[%c0_43, %c0_44], %61 {strides = array<i32>} : memref<8x128xf32, #tpu.memory_space<vmem>>, vector<8x128xf32>,
    } else {
    }
    %c0 = arith.constant 0 : index
    %c0_1 = arith.constant 0 : index
    %3 = vector.load %arg12[%c0, %c0_1] : memref<8x128xf32, #tpu.memory_space<vmem>>, vector<8x128xf32>
    %c0_2 = arith.constant 0 : index
    %c0_3 = arith.constant 0 : index
    %4 = vector.load %arg13[%c0_2, %c0_3] : memref<8x128xf32, #tpu.memory_space<vmem>>, vector<8x128xf32>
    %c0_4 = arith.constant 0 : index
    %c0_5 = arith.constant 0 : index
    %c0_6 = arith.constant 0 : index
    %5 = vector.load %arg1[%c0_4, %c0_5, %c0_6] : memref<1x8x8xf32, #tpu.memory_space<vmem>>, vector<1x8x8xf32>
    %6 = vector.shape_cast %5 : vector<1x8x8xf32> to vector<8x8xf32>
    %c0_7 = arith.constant 0 : index
    %c0_8 = arith.constant 0 : index
    %7 = vector.load %arg4[%c0_7, %c0_8] : memref<8x512xf32, #tpu.memory_space<vmem>>, vector<8x512xf32>
    %cst = arith.constant dense<0.000000e+00> : vector<8x512xf32>
    %8 = tpu.matmul %6, %7, %cst {dimension_numbers = #tpu.dot_dimension_numbers<[1], [0], [0], [1], [0, 0, 1, 1], [], []>} : vector<8x8xf32>, vector<8x512xf32>, vector<8x512xf32> -> vector<8x512xf32>
    %c0_9 = arith.constant 0 : index
    %c0_10 = arith.constant 0 : index
    %9 = vector.load %arg5[%c0_9, %c0_10] : memref<128x512xf32, #tpu.memory_space<vmem>>, vector<128x512xf32>
    %cst_11 = arith.constant dense<0.000000e+00> : vector<8x512xf32>
    %10 = tpu.matmul %3, %9, %cst_11 {dimension_numbers = #tpu.dot_dimension_numbers<[1], [0], [0], [1], [0, 0, 1, 1], [], []>} : vector<8x128xf32>, vector<128x512xf32>, vector<8x512xf32> -> vector<8x512xf32>
    %11 = arith.addf %8, %10 : vector<8x512xf32>
    %c0_12 = arith.constant 0 : index
    %c0_13 = arith.constant 0 : index
    %12 = vector.load %arg6[%c0_12, %c0_13] : memref<1x512xf32, #tpu.memory_space<vmem>>, vector<1x512xf32>
    %13 = vector.broadcast %12 : vector<1x512xf32> to vector<8x512xf32>
    %14 = arith.addf %11, %13 : vector<8x512xf32>
    %15 = vector.extract_strided_slice %14 {offsets = [0, 0], sizes = [8, 128], strides = [1, 1]} : vector<8x512xf32> to vector<8x128xf32>
    %cst_14 = arith.constant 5.000000e-01 : f32
    %16 = vector.broadcast %cst_14 : f32 to vector<8x128xf32>
    %17 = arith.mulf %16, %15 : vector<8x128xf32>
    %18 = math.tanh %17 : vector<8x128xf32>
    %cst_15 = arith.constant 1.000000e+00 : f32
    %19 = vector.broadcast %cst_15 : f32 to vector<8x128xf32>
    %20 = arith.addf %19, %18 : vector<8x128xf32>
    %cst_16 = arith.constant 5.000000e-01 : f32
    %21 = vector.broadcast %cst_16 : f32 to vector<8x128xf32>
    %22 = arith.mulf %21, %20 : vector<8x128xf32>
    %23 = vector.extract_strided_slice %14 {offsets = [0, 128], sizes = [8, 128], strides = [1, 1]} : vector<8x512xf32> to vector<8x128xf32>
    %cst_17 = arith.constant 5.000000e-01 : f32
    %24 = vector.broadcast %cst_17 : f32 to vector<8x128xf32>
    %25 = arith.mulf %24, %23 : vector<8x128xf32>
    %26 = math.tanh %25 : vector<8x128xf32>
    %cst_18 = arith.constant 1.000000e+00 : f32
    %27 = vector.broadcast %cst_18 : f32 to vector<8x128xf32>
    %28 = arith.addf %27, %26 : vector<8x128xf32>
    %cst_19 = arith.constant 5.000000e-01 : f32
    %29 = vector.broadcast %cst_19 : f32 to vector<8x128xf32>
    %30 = arith.mulf %29, %28 : vector<8x128xf32>
    %31 = vector.extract_strided_slice %14 {offsets = [0, 256], sizes = [8, 128], strides = [1, 1]} : vector<8x512xf32> to vector<8x128xf32>
    %32 = math.tanh %31 : vector<8x128xf32>
    %33 = vector.extract_strided_slice %14 {offsets = [0, 384], sizes = [8, 128], strides = [1, 1]} : vector<8x512xf32> to vector<8x128xf32>
    %cst_20 = arith.constant 5.000000e-01 : f32
    %34 = vector.broadcast %cst_20 : f32 to vector<8x128xf32>
    %35 = arith.mulf %34, %33 : vector<8x128xf32>
    %36 = math.tanh %35 : vector<8x128xf32>
    %cst_21 = arith.constant 1.000000e+00 : f32
    %37 = vector.broadcast %cst_21 : f32 to vector<8x128xf32>
    %38 = arith.addf %37, %36 : vector<8x128xf32>
    %cst_22 = arith.constant 5.000000e-01 : f32
    %39 = vector.broadcast %cst_22 : f32 to vector<8x128xf32>
    %40 = arith.mulf %39, %38 : vector<8x128xf32>
    %41 = arith.mulf %30, %4 : vector<8x128xf32>
    %42 = arith.mulf %22, %32 : vector<8x128xf32>
    %43 = arith.addf %41, %42 : vector<8x128xf32>
    %44 = math.tanh %43 : vector<8x128xf32>
    %45 = arith.mulf %40, %44 : vector<8x128xf32>
    %c0_23 = arith.constant 0 : index
    %c0_24 = arith.constant 0 : index
    %46 = vector.load %arg12[%c0_23, %c0_24] : memref<8x128xf32, #tpu.memory_space<vmem>>, vector<8x128xf32>
    tpu.vector_store %arg12[%c0_23, %c0_24], %45 {strides = array<i32>} : memref<8x128xf32, #tpu.memory_space<vmem>>, vector<8x128xf32>,
    %c0_25 = arith.constant 0 : index
    %c0_26 = arith.constant 0 : index
    %47 = vector.load %arg13[%c0_25, %c0_26] : memref<8x128xf32, #tpu.memory_space<vmem>>, vector<8x128xf32>
    tpu.vector_store %arg13[%c0_25, %c0_26], %43 {strides = array<i32>} : memref<8x128xf32, #tpu.memory_space<vmem>>, vector<8x128xf32>,
    %c0_27 = arith.constant 0 : index
    %c0_28 = arith.constant 0 : index
    %48 = vector.load %arg7[%c0_27, %c0_28] : memref<128x128xf32, #tpu.memory_space<vmem>>, vector<128x128xf32>
    %cst_29 = arith.constant dense<0.000000e+00> : vector<8x128xf32>
    %49 = tpu.matmul %45, %48, %cst_29 {dimension_numbers = #tpu.dot_dimension_numbers<[1], [0], [0], [1], [0, 0, 1, 1], [], []>} : vector<8x128xf32>, vector<128x128xf32>, vector<8x128xf32> -> vector<8x128xf32>
    %c0_30 = arith.constant 0 : index
    %c0_31 = arith.constant 0 : index
    %50 = vector.load %arg8[%c0_30, %c0_31] : memref<1x128xf32, #tpu.memory_space<vmem>>, vector<1x128xf32>
    %51 = vector.broadcast %50 : vector<1x128xf32> to vector<8x128xf32>
    %52 = arith.addf %49, %51 : vector<8x128xf32>
    %c0_32 = arith.constant 0 : index
    %c0_33 = arith.constant 0 : index
    %c0_34 = arith.constant 0 : index
    %53 = vector.load %arg9[%c0_32, %c0_33, %c0_34] : memref<1x8x128xf32, #tpu.memory_space<vmem>>, vector<1x8x128xf32>
    %54 = vector.shape_cast %53 : vector<1x8x128xf32> to vector<8x128xf32>
    %55 = vector.shape_cast %52 : vector<8x128xf32> to vector<1x8x128xf32>
    tpu.vector_store %arg9[%c0_32, %c0_33, %c0_34], %55 {strides = array<i32>} : memref<1x8x128xf32, #tpu.memory_space<vmem>>, vector<1x8x128xf32>,
    %c0_i32_35 = arith.constant 0 : i32
    %56 = arith.cmpi eq, %arg0, %c0_i32_35 : i32
    %57 = arith.extui %56 : i1 to i32
    %c0_i32_36 = arith.constant 0 : i32
    %58 = arith.cmpi ne, %57, %c0_i32_36 : i32
    scf.if %58 {
      %c0_37 = arith.constant 0 : index
      %c0_38 = arith.constant 0 : index
      %59 = vector.load %arg10[%c0_37, %c0_38] : memref<8x128xf32, #tpu.memory_space<vmem>>, vector<8x128xf32>
      tpu.vector_store %arg10[%c0_37, %c0_38], %45 {strides = array<i32>} : memref<8x128xf32, #tpu.memory_space<vmem>>, vector<8x128xf32>,
      %c0_39 = arith.constant 0 : index
      %c0_40 = arith.constant 0 : index
      %60 = vector.load %arg11[%c0_39, %c0_40] : memref<8x128xf32, #tpu.memory_space<vmem>>, vector<8x128xf32>
      tpu.vector_store %arg11[%c0_39, %c0_40], %43 {strides = array<i32>} : memref<8x128xf32, #tpu.memory_space<vmem>>, vector<8x128xf32>,
    } else {
    }
    return
  }
  func.func @transform_0(%arg0: i32) -> (i32, i32, i32) {
    %c0_i32 = arith.constant 0 : i32
    %c0_i32_0 = arith.constant 0 : i32
    %c0_i32_1 = arith.constant 0 : i32
    return %arg0, %c0_i32, %c0_i32_0 : i32, i32, i32
  }
  func.func @transform_1(%arg0: i32) -> (i32, i32) {
    %c0_i32 = arith.constant 0 : i32
    %c0_i32_0 = arith.constant 0 : i32
    %c0_i32_1 = arith.constant 0 : i32
    return %c0_i32, %c0_i32_0 : i32, i32
  }
  func.func @transform_2(%arg0: i32) -> (i32, i32) {
    %c0_i32 = arith.constant 0 : i32
    %c0_i32_0 = arith.constant 0 : i32
    %c0_i32_1 = arith.constant 0 : i32
    return %c0_i32, %c0_i32_0 : i32, i32
  }
  func.func @transform_3(%arg0: i32) -> (i32, i32) {
    %c0_i32 = arith.constant 0 : i32
    %c0_i32_0 = arith.constant 0 : i32
    %c0_i32_1 = arith.constant 0 : i32
    return %c0_i32, %c0_i32_0 : i32, i32
  }
  func.func @transform_4(%arg0: i32) -> (i32, i32) {
    %c0_i32 = arith.constant 0 : i32
    %c0_i32_0 = arith.constant 0 : i32
    %c0_i32_1 = arith.constant 0 : i32
    return %c0_i32, %c0_i32_0 : i32, i32
  }
  func.func @transform_5(%arg0: i32) -> (i32, i32) {
    %c0_i32 = arith.constant 0 : i32
    %c0_i32_0 = arith.constant 0 : i32
    %c0_i32_1 = arith.constant 0 : i32
    return %c0_i32, %c0_i32_0 : i32, i32
  }
  func.func @transform_6(%arg0: i32) -> (i32, i32) {
    %c0_i32 = arith.constant 0 : i32
    %c0_i32_0 = arith.constant 0 : i32
    %c0_i32_1 = arith.constant 0 : i32
    return %c0_i32, %c0_i32_0 : i32, i32
  }
  func.func @transform_7(%arg0: i32) -> (i32, i32) {
    %c0_i32 = arith.constant 0 : i32
    %c0_i32_0 = arith.constant 0 : i32
    %c0_i32_1 = arith.constant 0 : i32
    return %c0_i32, %c0_i32_0 : i32, i32
  }
  func.func @transform_8(%arg0: i32) -> (i32, i32, i32) {
    %c0_i32 = arith.constant 0 : i32
    %c0_i32_0 = arith.constant 0 : i32
    %c0_i32_1 = arith.constant 0 : i32
    return %arg0, %c0_i32, %c0_i32_0 : i32, i32, i32
  }
  func.func @transform_9(%arg0: i32) -> (i32, i32) {
    %c0_i32 = arith.constant 0 : i32
    %c0_i32_0 = arith.constant 0 : i32
    %c0_i32_1 = arith.constant 0 : i32
    return %c0_i32, %c0_i32_0 : i32, i32
  }
  func.func @transform_10(%arg0: i32) -> (i32, i32) {
    %c0_i32 = arith.constant 0 : i32
    %c0_i32_0 = arith.constant 0 : i32
    %c0_i32_1 = arith.constant 0 : i32
    return %c0_i32, %c0_i32_0 : i32, i32
  }
}

</mosaic_0001>

<bundles_post_ra>
// kernel: lstm_decoder_forward.1
= control target key start
LH: loop header
LB: loop body
LE: loop exit
PB: predicated region body
PF: predicated region fallthrough
CT: control target
= control target key end

     0   :  { %16 = vsyncpa [#allocation5], 0  ;;  %s929_s0 = inlined_call_operand.vmem [shape: f32[1,8,8], index: 0, kind: input, shape index: {}]   ;;  %s930_s1 = inlined_call_operand.vmem [shape: f32[8,128], index: 1, kind: input, shape index: {}, may-alias: {1,9}]   ;;  %s931_s2 = inlined_call_operand.vmem [shape: f32[8,128], index: 2, kind: input, shape index: {}, may-alias: {2,10}]   ;;  %s932_s3 = inlined_call_operand.vmem [shape: f32[8,512], index: 3, kind: input, shape index: {}]   ;;  %s933_s4 = inlined_call_operand.hbm [shape: f32[128,512], index: 4, kind: input, shape index: {}]   ;;  %s934_s5 = inlined_call_operand.vmem [shape: f32[1,512], index: 5, kind: input, shape index: {}]   ;;  %s935_s6 = inlined_call_operand.hbm [shape: f32[128,128], index: 6, kind: input, shape index: {}]   ;;  %s936_s7 = inlined_call_operand.vmem [shape: f32[1,128], index: 7, kind: input, shape index: {}]   ;;  %s937_s8 = inlined_call_operand.vmem [shape: f32[1,8,128], index: 8, kind: output, shape index: {0}]   ;;  %s938_s9 = inlined_call_operand.vmem [shape: f32[8,128], index: 9, kind: output, shape index: {1}, may-alias: {1,9}]   ;;  %s939_s10 = inlined_call_operand.vmem [shape: f32[8,128], index: 10, kind: output, shape index: {2}, may-alias: {2,10}]  }
   0x1   :  { %17 = vsyncpa [#allocation7], 0  ;;  %s800_s13 = smov [#allocation4]   ;;  %s752_s17 = scalar_lea.hbm %s933_s4, 8192 }
   0x2   :  { %s31_s14 = sshll.u32 %s800_s13, 4  ;;  %p753_p0 = scmp.ne.s32.totalorder %s933_s4, %s752_s17  ;;  %s32_s14 = int_to_ptr.vmem [resolvable:$true] %s31_s14 }
   0x3   :  { %p756_p1 = scmp.lt.u32.totalorder %s752_s17, %s933_s4 }
   0x5   :  { %p758_p2 = pnand %p756_p1, %p753_p0 }
   0x7   :  { %761 = shalt.err (!%p758_p2)
}
   0x8   :  { %s762_s22 = scalar_lea.vmem %s32_s14, 8192  ;;  %p767_p4 = scmp.lt.s32.totalorder %s32_s14, %s32_s14 }
   0x9   :  { %p763_p3 = scmp.ne.s32.totalorder %s32_s14, %s762_s22  ;;  %p768_p5 = scmp.lt.s32.totalorder %s762_s22, %s762_s22 }
   0xb   :  { %p769_p6 = por %p768_p5, %p767_p4 }
   0xd   :  { %p770_p7 = pnand %p769_p6, %p763_p3 }
   0xf   :  { %773 = shalt.err (!%p770_p7)
}
  0x10   :  { %s801_s23 = smov 512   ;;  %s802_s24 = smov 32  }
  0x11   :  { %37 = dma.hbm_to_vmem [thread:$0]  %s933_s4, 8192, %s32_s14, [#allocation5], %s801_s23, %s801_s23, %s802_s24  }
  0x12   :  { %s803_s27 = smov [#allocation6]   ;;  %s774_s11 = scalar_lea.hbm %s935_s6, 2048 }
  0x13   :  { %s45_s28 = sshll.u32 %s803_s27, 4  ;;  %p775_p8 = scmp.ne.s32.totalorder %s935_s6, %s774_s11  ;;  %s46_s28 = int_to_ptr.vmem [resolvable:$true] %s45_s28 }
  0x14   :  { %p778_p9 = scmp.lt.u32.totalorder %s774_s11, %s935_s6 }
  0x16   :  { %p780_p10 = pnand %p778_p9, %p775_p8 }
  0x18   :  { %783 = shalt.err (!%p780_p10)
}
  0x19   :  { %s784_s17 = scalar_lea.vmem %s46_s28, 2048  ;;  %p789_p12 = scmp.lt.s32.totalorder %s46_s28, %s46_s28 }
  0x1a   :  { %p785_p11 = scmp.ne.s32.totalorder %s46_s28, %s784_s17  ;;  %p790_p13 = scmp.lt.s32.totalorder %s784_s17, %s784_s17 }
  0x1c   :  { %p791_p0 = por %p790_p13, %p789_p12 }
  0x1e   :  { %p792_p1 = pnand %p791_p0, %p785_p11 }
  0x20   :  { %795 = shalt.err (!%p792_p1)
}
  0x21   :  { %s804_s4 = smov 128   ;;  %s805_s14 = smov 8  }
  0x22   :  { %51 = dma.hbm_to_vmem [thread:$0]  %s935_s6, 2048, %s46_s28, [#allocation7], %s804_s4, %s804_s4, %s805_s14  }
  0x23   :  { %796 = dma.done.wait [#allocation5], 8192  }
  0x24   :  { %797 = vsyncadd [#allocation5], 4294959104 }
  0x25   :  { %798 = dma.done.wait [#allocation7], 2048  }
  0x26   :  { %799 = vsyncadd [#allocation7], 4294965248  ;;  %v806_v0 = vmov 0.0   ;;  %v78_v1 = vld [vmem:[#allocation4 + $0x18] sm:$0xff]  ;;  %v77_v3 = vld [vmem:[#allocation4 + $0x10] sm:$0xff]  ;;  %vm281_vm0 = vcmask 64512  }
  0x27   :  { %274 = vmatprep.mubr.f32.mxu1 %v806_v0  ;;  %203 = vmatprep.mubr.f32.mxu0 %v806_v0  ;;  %v82_v2 = vld [vmem:[#allocation4 + $0x38] sm:$0xff]  ;;  %v81_v5 = vld [vmem:[#allocation4 + $0x30] sm:$0xff]  ;;  %v76_v6 = vld [vmem:[#allocation4 + $0x8] sm:$0xff]  ;;  %vm808_vm1 = vmmov 0  }
  0x28   :  { %v673_v4 = vpack.c.bf16 %v82_v2, %v78_v1  ;;  %v80_v7 = vld [vmem:[#allocation4 + $0x28] sm:$0xff]  ;;  %v675_v8 = vpack.c.bf16 %v81_v5, %v77_v3  ;;  %v86_v10 = vld [vmem:[#allocation4 + $0x58] sm:$0xff]  ;;  %v75_v12 = vld [vmem:[#allocation4] sm:$0xff] }
  0x29   :  { %v641_v9 = vpack.c.bf16 %v80_v7, %v76_v6  ;;  %v90_v11 = vld [vmem:[#allocation4 + $0x78] sm:$0xff]  ;;  %v79_v14 = vld [vmem:[#allocation4 + $0x20] sm:$0xff]  ;;  %v85_v15 = vld [vmem:[#allocation4 + $0x50] sm:$0xff] }
  0x2a   :  { %674 = vmatprep.subr.bf16.mxu1 %v673_v4  ;;  %v677_v13 = vpack.c.bf16 %v90_v11, %v86_v10  ;;  %v89_v16 = vld [vmem:[#allocation4 + $0x70] sm:$0xff]  ;;  %v643_v17 = vpack.c.bf16 %v79_v14, %v75_v12  ;;  %v84_v19 = vld [vmem:[#allocation4 + $0x48] sm:$0xff]  ;;  %v94_v21 = vld [vmem:[#allocation4 + $0x98] sm:$0xff] }
  0x2b   :  { %676 = vmatpush1.bf16.msra.mxu1 %v675_v8  ;;  %642 = vmatprep.subr.bf16.mxu0 %v641_v9  ;;  %v679_v18 = vpack.c.bf16 %v89_v16, %v85_v15  ;;  %v88_v20 = vld [vmem:[#allocation4 + $0x68] sm:$0xff]  ;;  %v98_v23 = vld [vmem:[#allocation4 + $0xb8] sm:$0xff]  ;;  %v83_v24 = vld [vmem:[#allocation4 + $0x40] sm:$0xff] }
  0x2c   :  { %678 = vmatprep.subr.bf16.mxu1 %v677_v13  ;;  %v645_v22 = vpack.c.bf16 %v88_v20, %v84_v19  ;;  %v87_v25 = vld [vmem:[#allocation4 + $0x60] sm:$0xff]  ;;  %644 = vmatpush1.bf16.msra.mxu0 %v643_v17  ;;  %v681_v26 = vpack.c.bf16 %v98_v23, %v94_v21  ;;  %v93_v28 = vld [vmem:[#allocation4 + $0x90] sm:$0xff]  ;;  %v92_v30 = vld [vmem:[#allocation4 + $0x88] sm:$0xff] }
  0x2d   :  { %v647_v27 = vpack.c.bf16 %v87_v25, %v83_v24  ;;  %v97_v29 = vld [vmem:[#allocation4 + $0xb0] sm:$0xff]  ;;  %v96_v31 = vld [vmem:[#allocation4 + $0xa8] sm:$0xff]  ;;  %v102_v32 = vld [vmem:[#allocation4 + $0xd8] sm:$0xff] }
  0x2e   :  { %646 = vmatprep.subr.bf16.mxu0 %v645_v22  ;;  %v106_v33 = vld [vmem:[#allocation4 + $0xf8] sm:$0xff]  ;;  %v683_v34 = vpack.c.bf16 %v97_v29, %v93_v28  ;;  %v649_v35 = vpack.c.bf16 %v96_v31, %v92_v30  ;;  %v91_v36 = vld [vmem:[#allocation4 + $0x80] sm:$0xff]  ;;  %v101_v38 = vld [vmem:[#allocation4 + $0xd0] sm:$0xff] }
  0x2f   :  { %680 = vmatpush1.bf16.msra.mxu1 %v679_v18  ;;  %v95_v37 = vld [vmem:[#allocation4 + $0xa0] sm:$0xff]  ;;  %v685_v39 = vpack.c.bf16 %v106_v33, %v102_v32  ;;  %v105_v40 = vld [vmem:[#allocation4 + $0xf0] sm:$0xff]  ;;  %v100_v41 = vld [vmem:[#allocation4 + $0xc8] sm:$0xff] }
  0x30   :  { %682 = vmatprep.subr.bf16.mxu1 %v681_v26  ;;  %v104_v42 = vld [vmem:[#allocation4 + $0xe8] sm:$0xff]  ;;  %648 = vmatpush1.bf16.msra.mxu0 %v647_v27  ;;  %v651_v43 = vpack.c.bf16 %v95_v37, %v91_v36  ;;  %v110_v44 = vld [vmem:[#allocation4 + $0x118] sm:$0xff]  ;;  %v99_v47 = vld [vmem:[#allocation4 + $0xc0] sm:$0xff]  ;;  %v687_v49 = vpack.c.bf16 %v105_v40, %v101_v38 }
  0x31   :  { %v114_v45 = vld [vmem:[#allocation4 + $0x138] sm:$0xff]  ;;  %650 = vmatprep.subr.bf16.mxu0 %v649_v35  ;;  %v653_v46 = vpack.c.bf16 %v104_v42, %v100_v41  ;;  %v103_v48 = vld [vmem:[#allocation4 + $0xe0] sm:$0xff]  ;;  %v108_v50 = vld [vmem:[#allocation4 + $0x108] sm:$0xff] }
  0x32   :  { %v112_v51 = vld [vmem:[#allocation4 + $0x128] sm:$0xff]  ;;  %v689_v52 = vpack.c.bf16 %v114_v45, %v110_v44  ;;  %v109_v53 = vld [vmem:[#allocation4 + $0x110] sm:$0xff]  ;;  %v655_v55 = vpack.c.bf16 %v103_v48, %v99_v47  ;;  %v118_v56 = vld [vmem:[#allocation4 + $0x158] sm:$0xff] }
  0x33   :  { %684 = vmatpush1.bf16.msra.mxu1 %v683_v34  ;;  %v113_v54 = vld [vmem:[#allocation4 + $0x130] sm:$0xff]  ;;  %v122_v57 = vld [vmem:[#allocation4 + $0x178] sm:$0xff]  ;;  %v657_v58 = vpack.c.bf16 %v112_v51, %v108_v50  ;;  %v107_v59 = vld [vmem:[#allocation4 + $0x100] sm:$0xff] }
  0x34   :  { %686 = vmatprep.subr.bf16.mxu1 %v685_v39  ;;  %652 = vmatpush1.bf16.msra.mxu0 %v651_v43  ;;  %v111_v60 = vld [vmem:[#allocation4 + $0x120] sm:$0xff]  ;;  %v691_v61 = vpack.c.bf16 %v113_v54, %v109_v53  ;;  %v116_v62 = vld [vmem:[#allocation4 + $0x148] sm:$0xff]  ;;  %v693_v1 = vpack.c.bf16 %v122_v57, %v118_v56  ;;  %v117_v2 = vld [vmem:[#allocation4 + $0x150] sm:$0xff]  ;;  %v807_v43 = vmov 0.0|0.0  }
  0x35   :  { %654 = vmatprep.subr.bf16.mxu0 %v653_v46  ;;  %v120_v63 = vld [vmem:[#allocation4 + $0x168] sm:$0xff]  ;;  %v121_v3 = vld [vmem:[#allocation4 + $0x170] sm:$0xff]  ;;  %v659_v4 = vpack.c.bf16 %v111_v60, %v107_v59  ;;  %v126_v5 = vld [vmem:[#allocation4 + $0x198] sm:$0xff] }
  0x36   :  { %v130_v6 = vld [vmem:[#allocation4 + $0x1b8] sm:$0xff]  ;;  %v661_v7 = vpack.c.bf16 %v120_v63, %v116_v62  ;;  %v115_v8 = vld [vmem:[#allocation4 + $0x140] sm:$0xff]  ;;  %v695_v10 = vpack.c.bf16 %v121_v3, %v117_v2  ;;  %v124_v11 = vld [vmem:[#allocation4 + $0x188] sm:$0xff]  ;;  %v429_v2 = vlaneseq }
  0x37   :  { %688 = vmatpush1.bf16.msra.mxu1 %v687_v49  ;;  %v119_v9 = vld [vmem:[#allocation4 + $0x160] sm:$0xff]  ;;  %v128_v12 = vld [vmem:[#allocation4 + $0x1a8] sm:$0xff]  ;;  %v697_v13 = vpack.c.bf16 %v130_v6, %v126_v5  ;;  %v125_v14 = vld [vmem:[#allocation4 + $0x190] sm:$0xff] }
  0x38   :  { %690 = vmatprep.subr.bf16.mxu1 %v689_v52  ;;  %656 = vmatpush1.bf16.msra.mxu0 %v655_v55  ;;  %v129_v15 = vld [vmem:[#allocation4 + $0x1b0] sm:$0xff]  ;;  %v663_v16 = vpack.c.bf16 %v119_v9, %v115_v8  ;;  %v134_v17 = vld [vmem:[#allocation4 + $0x1d8] sm:$0xff]  ;;  %v665_v19 = vpack.c.bf16 %v128_v12, %v124_v11  ;;  %v123_v20 = vld [vmem:[#allocation4 + $0x180] sm:$0xff]  ;;  %v430_v3 = vshrl.u32 %v429_v2, 7 }
  0x39   :  { %658 = vmatprep.subr.bf16.mxu0 %v657_v58  ;;  %v138_v18 = vld [vmem:[#allocation4 + $0x1f8] sm:$0xff]  ;;  %v127_v21 = vld [vmem:[#allocation4 + $0x1a0] sm:$0xff]  ;;  %v699_v22 = vpack.c.bf16 %v129_v15, %v125_v14  ;;  %v132_v23 = vld [vmem:[#allocation4 + $0x1c8] sm:$0xff] }
  0x3a   :  { %v136_v24 = vld [vmem:[#allocation4 + $0x1e8] sm:$0xff]  ;;  %v701_v25 = vpack.c.bf16 %v138_v18, %v134_v17  ;;  %v133_v26 = vld [vmem:[#allocation4 + $0x1d0] sm:$0xff]  ;;  %v667_v28 = vpack.c.bf16 %v127_v21, %v123_v20  ;;  %v131_v30 = vld [vmem:[#allocation4 + $0x1c0] sm:$0xff]  ;;  %v435_v6 = vsub.s32 1, %v430_v3 }
  0x3b   :  { %692 = vmatpush1.bf16.msra.mxu1 %v691_v61  ;;  %v137_v27 = vld [vmem:[#allocation4 + $0x1f0] sm:$0xff]  ;;  %v669_v29 = vpack.c.bf16 %v136_v24, %v132_v23  ;;  %v135_v31 = vld [vmem:[#allocation4 + $0x1e0] sm:$0xff]  ;;  %v72_v33 = vld [vmem:[%s932_s3 + $0x8] sm:$0xff] }
  0x3c   :  { %694 = vmatprep.subr.bf16.mxu1 %v693_v1  ;;  %660 = vmatpush1.bf16.msra.mxu0 %v659_v4  ;;  %v703_v32 = vpack.c.bf16 %v137_v27, %v133_v26  ;;  %v671_v34 = vpack.c.bf16 %v135_v31, %v131_v30  ;;  %v64_v35 = vld [vmem:[%s930_s1] sm:$0xff]  ;;  %v74_v37 = vld [vmem:[%s932_s3 + $0x18] sm:$0xff]  ;;  %v73_v39 = vld [vmem:[%s932_s3 + $0x10] sm:$0xff]  ;;  %v431_v4 = vsub.s32 0, %v430_v3 }
  0x3d   :  { %662 = vmatprep.subr.bf16.mxu0 %v661_v7  ;;  %v71_v36 = vld [vmem:[%s932_s3] sm:$0xff]  ;;  %v474_v41 = vld [vmem:[#allocation6 + $0x8] sm:$0xff]  ;;  %v475_v44 = vld [vmem:[#allocation6 + $0x10] sm:$0xff] }
  0x3e   :  { %v70_v38 = vld [vmem:[%s929_s0] sm:$0xff]  ;;  %v476_v45 = vld [vmem:[#allocation6 + $0x18] sm:$0xff]  ;;  %v478_v48 = vld [vmem:[#allocation6 + $0x28] sm:$0xff] }
  0x3f   :  { %696 = vmatpush1.bf16.msra.mxu1 %v695_v10  ;;  %v473_v40 = vld [vmem:[#allocation6] sm:$0xff]  ;;  %v709_v46 = vpack.c.bf16 %v476_v45, %v475_v44  ;;  %v479_v50 = vld [vmem:[#allocation6 + $0x30] sm:$0xff]  ;;  %v480_v51 = vld [vmem:[#allocation6 + $0x38] sm:$0xff]  ;;  %v439_v10 = vsub.s32 2, %v430_v3 }
  0x40   :  { %698 = vmatprep.subr.bf16.mxu1 %v697_v13  ;;  %664 = vmatpush1.bf16.msra.mxu0 %v663_v16  ;;  %v706_v42 = vpack.c.bf16 %v474_v41, %v473_v40  ;;  %v477_v47 = vld [vmem:[#allocation6 + $0x20] sm:$0xff]  ;;  %v715_v52 = vpack.c.bf16 %v480_v51, %v479_v50  ;;  %v482_v54 = vld [vmem:[#allocation6 + $0x48] sm:$0xff]  ;;  %v483_v56 = vld [vmem:[#allocation6 + $0x50] sm:$0xff] }
  0x41   :  { %666 = vmatprep.subr.bf16.mxu0 %v665_v19  ;;  %v712_v49 = vpack.c.bf16 %v478_v48, %v477_v47  ;;  %v481_v53 = vld [vmem:[#allocation6 + $0x40] sm:$0xff]  ;;  %v484_v57 = vld [vmem:[#allocation6 + $0x58] sm:$0xff]  ;;  %v486_v60 = vld [vmem:[#allocation6 + $0x68] sm:$0xff] }
  0x42   :  { %v718_v55 = vpack.c.bf16 %v482_v54, %v481_v53  ;;  %v721_v58 = vpack.c.bf16 %v484_v57, %v483_v56  ;;  %v485_v59 = vld [vmem:[#allocation6 + $0x60] sm:$0xff]  ;;  %v487_v62 = vld [vmem:[#allocation6 + $0x70] sm:$0xff]  ;;  %v488_v63 = vld [vmem:[#allocation6 + $0x78] sm:$0xff] }
  0x43   :  { %700 = vmatpush1.bf16.msra.mxu1 %v699_v22  ;;  %v724_v61 = vpack.c.bf16 %v486_v60, %v485_v59  ;;  %v727_v1 = vpack.c.bf16 %v488_v63, %v487_v62  ;;  %v427_v5 = vld [vmem:[%s934_s5] sm:$0xf] }
  0x44   :  { %702 = vmatprep.subr.bf16.mxu1 %v701_v25  ;;  %668 = vmatpush1.bf16.msra.mxu0 %v667_v28  ;;  %v432_v8 = vrot.slane %v427_v5, %v431_v4  ;;  %v436_v12 = vrot.slane %v427_v5, %v435_v6  ;;  %v440_v17 = vrot.slane %v427_v5, %v439_v10 }
  0x45   :  { %670 = vmatprep.subr.bf16.mxu0 %v669_v29 }
  0x47   :  { %704 = vmatpush1.bf16.msra.mxu1 %v703_v32  ;;  %v66_v32 = vld [vmem:[%s931_s2] sm:$0xff] }
  0x48   :  { %285 = vmatprep.subr.mxu1 %v72_v33  ;;  %672 = vmatpush1.bf16.msra.mxu0 %v671_v34 }
  0x49   :  { %705 = vmatprep.subr.bf16.mxu0 %v807_v43 }
  0x4a   :  { %275 = vmatmul.mubr.f32.vlgmr.msra.gmra.mrb[0].mxu1 %v64_v35 }
  0x4b   :  { %286 = vmatpush1.msra.mxu1 %v71_v36  ;;  %349 = vmatprep.mubr.f32.mxu1 %v806_v0 }
  0x4c   :  { %204 = vmatmul.mubr.f32.vlgmr.msra.gmra.mrb[0].mxu0 %v64_v35  ;;  %356 = vmatprep.subr.mxu1 %v74_v37 }
  0x4d   :  { %707 = vmatpush3.bf16.msra.mxu0 %v706_v42  ;;  %638 = vmatprep.mubr.msk.f32.mxu0 %vm808_vm1, %v806_v0 }
  0x4e   :  { %586 = vmatmul.mubr.msk.f32.vlgmr.msra.gmra.mrb[2].mxu1 %vm281_vm0, %v70_v38  ;;  %708 = vmatprep.subr.bf16.mxu0 %v807_v43 }
  0x4f   :  { %357 = vmatpush1.msra.mxu1 %v73_v39  ;;  %420 = vmatprep.mubr.f32.mxu1 %v806_v0  ;;  %v443_v0 = vsub.s32 3, %v430_v3 }
  0x51   :  { %710 = vmatpush3.bf16.msra.mxu0 %v709_v46  ;;  %v444_v24 = vrot.slane %v427_v5, %v443_v0 }
  0x52   :  { %587 = vmatmul.mubr.msk.f32.vlgmr.msra.gmra.mrb[0].mxu1 %vm281_vm0, %v70_v38  ;;  %711 = vmatprep.subr.bf16.mxu0 %v807_v43 }
  0x55   :  { %713 = vmatpush3.bf16.msra.mxu0 %v712_v49 }
  0x56   :  { %714 = vmatprep.subr.bf16.mxu0 %v807_v43 }
  0x59   :  { %716 = vmatpush3.bf16.msra.mxu0 %v715_v52 }
  0x5a   :  { %717 = vmatprep.subr.bf16.mxu0 %v807_v43 }
  0x5d   :  { %719 = vmatpush3.bf16.msra.mxu0 %v718_v55 }
  0x5e   :  { %720 = vmatprep.subr.bf16.mxu0 %v807_v43 }
  0x61   :  { %722 = vmatpush3.bf16.msra.mxu0 %v721_v58 }
  0x62   :  { %723 = vmatprep.subr.bf16.mxu0 %v807_v43 }
  0x65   :  { %725 = vmatpush3.bf16.msra.mxu0 %v724_v61 }
  0x66   :  { %726 = vmatprep.subr.bf16.mxu0 %v807_v43  ;;  %v588_v43 = vld [vmem:[%s936_s7] ss:$0 sm:$0xff] }
  0x69   :  { %728 = vmatpush3.bf16.msra.mxu0 %v727_v1 }
 0x11f   :  { %v205_v7 = vpop.f32.mrb[0].mxu0 }
 0x120   :  { %v207_v9 = vpop.f32.mrb[1].mxu0 }
 0x121   :  { %v351_v11 = vpop.f32.mrb[2].mxu1 }
 0x122   :  { %v352_v13 = vadd.f32 %v351_v11, %v205_v7  ;;  %v353_v14 = vpop.f32.mrb[3].mxu1 }
 0x123   :  { %v354_v15 = vadd.f32 %v353_v14, %v207_v9 }
 0x124   :  { %v449_v16 = vadd.f32 %v432_v8, %v352_v13 }
 0x125   :  { %v450_v18 = vadd.f32 %v436_v12, %v354_v15  ;;  %v422_v19 = vpop.f32.mrb[0].mxu1 }
 0x126   :  { %v453_v20 = vmul.f32 0.5, %v449_v16  ;;  %v424_v21 = vpop.f32.mrb[1].mxu1  ;;  %v451_v23 = vadd.f32 %v440_v17, %v422_v19 }
 0x127   :  { %v457_v22 = vmul.f32 0.5, %v450_v18  ;;  %v452_v25 = vadd.f32 %v444_v24, %v424_v21 }
 0x128   :  { %742 = vtanh.f32 %v453_v20 }
 0x129   :  { %744 = vtanh.f32 %v457_v22  ;;  %v462_v26 = vmul.f32 0.5, %v452_v25 }
 0x12a   :  { %746 = vtanh.f32 %v451_v23 }
 0x12b   :  { %748 = vtanh.f32 %v462_v26 }
 0x132   :  { %v743_v27 = vpop.eup %742 }
 0x133   :  { %v745_v28 = vpop.eup %744  ;;  %v455_v29 = vadd.f32 1.0, %v743_v27 }
 0x134   :  { %v459_v30 = vadd.f32 1.0, %v745_v28  ;;  %v747_v33 = vpop.eup %746 }
 0x135   :  { %v456_v31 = vmul.f32 0.5, %v455_v29  ;;  %v749_v38 = vpop.eup %748 }
 0x136   :  { %v460_v34 = vmul.f32 0.5, %v459_v30  ;;  %v464_v39 = vadd.f32 1.0, %v749_v38 }
 0x137   :  { %v467_v35 = vmul.f32 %v747_v33, %v456_v31 }
 0x138   :  { %v466_v36 = vmul.f32 %v460_v34, %v66_v32  ;;  %v465_v40 = vmul.f32 0.5, %v464_v39 }
 0x13a   :  { %v468_v37 = vadd.f32 %v467_v35, %v466_v36 }
 0x13c   :  { %750 = vtanh.f32 %v468_v37  ;;  %571 = vst [vmem:[%s939_s10] sm:$0xff] %v468_v37 }
 0x146   :  { %v751_v41 = vpop.eup %750 }
 0x147   :  { %v470_v42 = vmul.f32 %v751_v41, %v465_v40 }
 0x149   :  { %570 = vst [vmem:[%s938_s9] sm:$0xff] %v470_v42  ;;  %639 = vmatmul.mubr.f32.vlgmr.msra.gmra.mrb[2].mxu0 %v470_v42 }
 0x21c   :  { %v562_v44 = vpop.f32.mrb[2].mxu0 }
 0x21d   :  { %v563_v45 = vadd.f32 %v588_v43, %v562_v44  ;;  %v640_v46 = vpop.f32.mrb[3].mxu0 }
 0x21f   :  { %566 = vst [vmem:[%s937_s8] sm:$0xff] %v563_v45 }
 0x220   :  { %584 = vsyncpa [#allocation5], 1 }
 0x221   :  { %585 = vsyncpa [#allocation7], 1 }

</bundles_post_ra>
